<compile_context>
chip_gen: v5e
topology: v5e:2x2
jax: 0.10.0
libtpu: 0.0.40
codegen_flags: <defaults>
</compile_context>

<pallas_src>
import jax
import jax.numpy as jnp
from jax.experimental import pallas as pl
from jax.experimental.pallas import tpu as pltpu

HIDDEN = 64
COMBINED_IN = 3 * HIDDEN   # 192
OUT_DIM = 128
# Double-buffered VMEM at tile=4096 f32 is ~5.5 MiB (3 inputs + output),
# comfortably inside the 32 MiB scoped limit on every TPU generation.
DEFAULT_TILE_N = 4096


def _tgn_kernel(xn_ref, xe_ref, xt_ref, wn_ref, we_ref, wt_ref, b_ref, out_ref):
    # Three narrow (tile, feat_i) @ (feat_i, 128) MXU passes into one f32
    # accumulator; bias add and (potential) downcast fused into the store.
    acc = jnp.dot(xn_ref[...], wn_ref[...], preferred_element_type=jnp.float32)
    acc = acc + jnp.dot(xe_ref[...], we_ref[...],
                        preferred_element_type=jnp.float32)
    acc = acc + jnp.dot(xt_ref[...], wt_ref[...],
                        preferred_element_type=jnp.float32)
    out_ref[...] = (acc + b_ref[...]).astype(out_ref.dtype)


def _pick_tile(n, tile_n):
    """Batch tile: sublane-aligned, capped, and split so grid >= 2 when possible."""
    tile = tile_n
    # If one tile would cover the whole batch and the batch is non-trivial,
    # split it so both v7x TensorCores get work (parallel grid axis).
    if tile >= n and n > 256:
        tile = ((-(-n // 2) + 255) // 256) * 256   # round_up(ceil(n/2), 256)
    tile = min(tile, n)
    tile = max(8, ((tile + 7) // 8) * 8)           # multiple of 8 sublanes
    return tile


def temporal_graph_network(node_emb, edge_emb, temp_emb,
                           wn_fold, we_fold, wt_fold, b_fold,
                           *, tile_n=DEFAULT_TILE_N):
    """Fused TGN forward.

    wn_fold: (nf, 128), we_fold: (ef, 128), wt_fold: (tf, 128), b_fold: (1, 128).
    """
    n, nf = node_emb.shape
    ef = edge_emb.shape[1]
    tf = temp_emb.shape[1]
    assert edge_emb.shape[0] == n and temp_emb.shape[0] == n
    assert wn_fold.shape == (nf, OUT_DIM)
    assert we_fold.shape == (ef, OUT_DIM)
    assert wt_fold.shape == (tf, OUT_DIM)
    assert b_fold.shape == (1, OUT_DIM)

    tile = _pick_tile(n, tile_n)
    grid = (pl.cdiv(n, tile),)

    return pl.pallas_call(
        _tgn_kernel,
        out_shape=jax.ShapeDtypeStruct((n, OUT_DIM), jnp.float32),
        grid=grid,
        in_specs=[
            # Streamed (double-buffered) activation tiles — no concat, no
            # (N, nf+ef+tf) intermediate in HBM.
            pl.BlockSpec((tile, nf), lambda i: (i, 0)),
            pl.BlockSpec((tile, ef), lambda i: (i, 0)),
            pl.BlockSpec((tile, tf), lambda i: (i, 0)),
            # Resident folded weights / bias (same tiny block every step).
            pl.BlockSpec((nf, OUT_DIM), lambda i: (0, 0)),
            pl.BlockSpec((ef, OUT_DIM), lambda i: (0, 0)),
            pl.BlockSpec((tf, OUT_DIM), lambda i: (0, 0)),
            pl.BlockSpec((1, OUT_DIM), lambda i: (0, 0)),
        ],
        out_specs=pl.BlockSpec((tile, OUT_DIM), lambda i: (i, 0)),
        compiler_params=pltpu.CompilerParams(
            # Batch tiles are independent -> shard across both TCs on v7x.
            dimension_semantics=("parallel",),
            vmem_limit_bytes=32 * 1024 * 1024,
        ),
    )(node_emb, edge_emb, temp_emb, wn_fold, we_fold, wt_fold, b_fold)


def init_params(key, node_features, edge_features, temporal_features):
    """PyTorch nn.Linear-style init (uniform +/- 1/sqrt(fan_in)), weights stored (in, out)."""
    ks = jax.random.split(key, 8)

    def lin(kw, kb, fan_in, fan_out):
        bound = 1.0 / jnp.sqrt(fan_in)
        w = jax.random.uniform(kw, (fan_in, fan_out), jnp.float32, -bound, bound)
        b = jax.random.uniform(kb, (1, fan_out), jnp.float32, -bound, bound)
        return w, b

    wn, bn = lin(ks[0], ks[1], node_features, HIDDEN)
    we, be = lin(ks[2], ks[3], edge_features, HIDDEN)
    wt, bt = lin(ks[4], ks[5], temporal_features, HIDDEN)
    wc, bc = lin(ks[6], ks[7], COMBINED_IN, OUT_DIM)
    return dict(wn=wn, bn=bn, we=we, be=be, wt=wt, bt=bt, wc=wc, bc=bc)


def fold_params(p):
    """Collapse encoders + concat + combined layer into per-stream affine maps (exact, f32)."""
    wc_n = p["wc"][0:HIDDEN, :]
    wc_e = p["wc"][HIDDEN:2 * HIDDEN, :]
    wc_t = p["wc"][2 * HIDDEN:3 * HIDDEN, :]
    wn_fold = p["wn"] @ wc_n
    we_fold = p["we"] @ wc_e
    wt_fold = p["wt"] @ wc_t
    b_fold = p["bn"] @ wc_n + p["be"] @ wc_e + p["bt"] @ wc_t + p["bc"]
    return wn_fold, we_fold, wt_fold, b_fold


def reference(node_emb, edge_emb, temp_emb, p):
    """Unfolded reference matching the PyTorch module exactly."""
    enc_n = node_emb @ p["wn"] + p["bn"]
    enc_e = edge_emb @ p["we"] + p["be"]
    enc_t = temp_emb @ p["wt"] + p["bt"]
    combined = jnp.concatenate([enc_n, enc_e, enc_t], axis=1)
    return combined @ p["wc"] + p["bc"]


if __name__ == "__main__":
    key = jax.random.PRNGKey(0)
    k_in, k_p = jax.random.split(key)

    batch = 64
    node_features, edge_features, temporal_features = 16, 12, 8

    kn, ke, kt = jax.random.split(k_in, 3)
    node_emb = jax.random.normal(kn, (batch, node_features), jnp.float32)
    edge_emb = jax.random.normal(ke, (batch, edge_features), jnp.float32)
    temp_emb = jax.random.normal(kt, (batch, temporal_features), jnp.float32)

    params = init_params(k_p, node_features, edge_features, temporal_features)
    wn_fold, we_fold, wt_fold, b_fold = fold_params(params)

    # Small tile here so the demo exercises a real multi-step pipelined grid.
    out = temporal_graph_network(node_emb, edge_emb, temp_emb,
                                 wn_fold, we_fold, wt_fold, b_fold,
                                 tile_n=16)
    out = jax.block_until_ready(out)

    ref = reference(node_emb, edge_emb, temp_emb, params)
    assert out.shape == (batch, OUT_DIM)
    assert jnp.allclose(out, ref, atol=1e-4, rtol=1e-4), "mismatch vs reference"

    print("KERNEL_OK")
</pallas_src>

<mosaic_0001>
module attributes {stable_mosaic.version = 11 : i64} {
  func.func @_tgn_kernel(%arg0: i32, %arg1: memref<16x16xf32, #tpu.memory_space<vmem>>, %arg2: memref<16x12xf32, #tpu.memory_space<vmem>>, %arg3: memref<16x8xf32, #tpu.memory_space<vmem>>, %arg4: memref<16x128xf32, #tpu.memory_space<vmem>>, %arg5: memref<12x128xf32, #tpu.memory_space<vmem>>, %arg6: memref<8x128xf32, #tpu.memory_space<vmem>>, %arg7: memref<1x128xf32, #tpu.memory_space<vmem>>, %arg8: memref<16x128xf32, #tpu.memory_space<vmem>>) attributes {dimension_semantics = [#tpu.dimension_semantics<parallel>], iteration_bounds = array<i64: 4>, scalar_prefetch = 0 : i64, scratch_operands = 0 : i64, tpu.core_type = #tpu.core_type<tc>, window_params = [{transform_indices = @transform_0, window_bounds = array<i64: 16, 16>}, {transform_indices = @transform_1, window_bounds = array<i64: 16, 12>}, {transform_indices = @transform_2, window_bounds = array<i64: 16, 8>}, {pipeline_mode = #tpu.pipeline_mode<synchronous>, transform_indices = @transform_3, window_bounds = array<i64: 16, 128>}, {pipeline_mode = #tpu.pipeline_mode<synchronous>, transform_indices = @transform_4, window_bounds = array<i64: 12, 128>}, {pipeline_mode = #tpu.pipeline_mode<synchronous>, transform_indices = @transform_5, window_bounds = array<i64: 8, 128>}, {pipeline_mode = #tpu.pipeline_mode<synchronous>, transform_indices = @transform_6, window_bounds = array<i64: 1, 128>}, {transform_indices = @transform_7, window_bounds = array<i64: 16, 128>}]} {
    %c0 = arith.constant 0 : index
    %c0_0 = arith.constant 0 : index
    %0 = vector.load %arg1[%c0, %c0_0] : memref<16x16xf32, #tpu.memory_space<vmem>>, vector<16x16xf32>
    %c0_1 = arith.constant 0 : index
    %c0_2 = arith.constant 0 : index
    %1 = vector.load %arg4[%c0_1, %c0_2] : memref<16x128xf32, #tpu.memory_space<vmem>>, vector<16x128xf32>
    %cst = arith.constant dense<0.000000e+00> : vector<16x128xf32>
    %2 = tpu.matmul %0, %1, %cst {dimension_numbers = #tpu.dot_dimension_numbers<[1], [0], [0], [1], [0, 0, 1, 1], [], []>} : vector<16x16xf32>, vector<16x128xf32>, vector<16x128xf32> -> vector<16x128xf32>
    %c0_3 = arith.constant 0 : index
    %c0_4 = arith.constant 0 : index
    %3 = vector.load %arg2[%c0_3, %c0_4] : memref<16x12xf32, #tpu.memory_space<vmem>>, vector<16x12xf32>
    %c0_5 = arith.constant 0 : index
    %c0_6 = arith.constant 0 : index
    %4 = vector.load %arg5[%c0_5, %c0_6] : memref<12x128xf32, #tpu.memory_space<vmem>>, vector<12x128xf32>
    %cst_7 = arith.constant dense<0.000000e+00> : vector<16x128xf32>
    %5 = tpu.matmul %3, %4, %cst_7 {dimension_numbers = #tpu.dot_dimension_numbers<[1], [0], [0], [1], [0, 0, 1, 1], [], []>} : vector<16x12xf32>, vector<12x128xf32>, vector<16x128xf32> -> vector<16x128xf32>
    %6 = arith.addf %2, %5 : vector<16x128xf32>
    %c0_8 = arith.constant 0 : index
    %c0_9 = arith.constant 0 : index
    %7 = vector.load %arg3[%c0_8, %c0_9] : memref<16x8xf32, #tpu.memory_space<vmem>>, vector<16x8xf32>
    %c0_10 = arith.constant 0 : index
    %c0_11 = arith.constant 0 : index
    %8 = vector.load %arg6[%c0_10, %c0_11] : memref<8x128xf32, #tpu.memory_space<vmem>>, vector<8x128xf32>
    %cst_12 = arith.constant dense<0.000000e+00> : vector<16x128xf32>
    %9 = tpu.matmul %7, %8, %cst_12 {dimension_numbers = #tpu.dot_dimension_numbers<[1], [0], [0], [1], [0, 0, 1, 1], [], []>} : vector<16x8xf32>, vector<8x128xf32>, vector<16x128xf32> -> vector<16x128xf32>
    %10 = arith.addf %6, %9 : vector<16x128xf32>
    %c0_13 = arith.constant 0 : index
    %c0_14 = arith.constant 0 : index
    %11 = vector.load %arg7[%c0_13, %c0_14] : memref<1x128xf32, #tpu.memory_space<vmem>>, vector<1x128xf32>
    %12 = vector.broadcast %11 : vector<1x128xf32> to vector<16x128xf32>
    %13 = arith.addf %10, %12 : vector<16x128xf32>
    %c0_15 = arith.constant 0 : index
    %c0_16 = arith.constant 0 : index
    %14 = vector.load %arg8[%c0_15, %c0_16] : memref<16x128xf32, #tpu.memory_space<vmem>>, vector<16x128xf32>
    tpu.vector_store %arg8[%c0_15, %c0_16], %13 {strides = array<i32>} : memref<16x128xf32, #tpu.memory_space<vmem>>, vector<16x128xf32>,
    return
  }
  func.func @transform_0(%arg0: i32) -> (i32, i32) {
    %c0_i32 = arith.constant 0 : i32
    %c0_i32_0 = arith.constant 0 : i32
    return %arg0, %c0_i32 : i32, i32
  }
  func.func @transform_1(%arg0: i32) -> (i32, i32) {
    %c0_i32 = arith.constant 0 : i32
    %c0_i32_0 = arith.constant 0 : i32
    return %arg0, %c0_i32 : i32, i32
  }
  func.func @transform_2(%arg0: i32) -> (i32, i32) {
    %c0_i32 = arith.constant 0 : i32
    %c0_i32_0 = arith.constant 0 : i32
    return %arg0, %c0_i32 : i32, i32
  }
  func.func @transform_3(%arg0: i32) -> (i32, i32) {
    %c0_i32 = arith.constant 0 : i32
    %c0_i32_0 = arith.constant 0 : i32
    %c0_i32_1 = arith.constant 0 : i32
    return %c0_i32, %c0_i32_0 : i32, i32
  }
  func.func @transform_4(%arg0: i32) -> (i32, i32) {
    %c0_i32 = arith.constant 0 : i32
    %c0_i32_0 = arith.constant 0 : i32
    %c0_i32_1 = arith.constant 0 : i32
    return %c0_i32, %c0_i32_0 : i32, i32
  }
  func.func @transform_5(%arg0: i32) -> (i32, i32) {
    %c0_i32 = arith.constant 0 : i32
    %c0_i32_0 = arith.constant 0 : i32
    %c0_i32_1 = arith.constant 0 : i32
    return %c0_i32, %c0_i32_0 : i32, i32
  }
  func.func @transform_6(%arg0: i32) -> (i32, i32) {
    %c0_i32 = arith.constant 0 : i32
    %c0_i32_0 = arith.constant 0 : i32
    %c0_i32_1 = arith.constant 0 : i32
    return %c0_i32, %c0_i32_0 : i32, i32
  }
  func.func @transform_7(%arg0: i32) -> (i32, i32) {
    %c0_i32 = arith.constant 0 : i32
    %c0_i32_0 = arith.constant 0 : i32
    return %arg0, %c0_i32 : i32, i32
  }
}

</mosaic_0001>

<bundles_post_ra>
// kernel: tpu_custom_call.1
= control target key start
LH: loop header
LB: loop body
LE: loop exit
PB: predicated region body
PF: predicated region fallthrough
CT: control target
= control target key end

     0   :  { %12 = vsyncpa [#allocation3], 0  ;;  %s825_s0 = inlined_call_operand.vmem [shape: f32[64,16], index: 0, kind: input, shape index: {}]   ;;  %s826_s1 = inlined_call_operand.vmem [shape: f32[64,12], index: 1, kind: input, shape index: {}]   ;;  %s827_s2 = inlined_call_operand.vmem [shape: f32[64,8], index: 2, kind: input, shape index: {}]   ;;  %s828_s3 = inlined_call_operand.vmem [shape: f32[16,128], index: 3, kind: input, shape index: {}]   ;;  %s829_s4 = inlined_call_operand.vmem [shape: f32[12,128], index: 4, kind: input, shape index: {}]   ;;  %s830_s5 = inlined_call_operand.vmem [shape: f32[8,128], index: 5, kind: input, shape index: {}]   ;;  %s831_s6 = inlined_call_operand.vmem [shape: f32[1,128], index: 6, kind: input, shape index: {}]   ;;  %s832_s7 = inlined_call_operand.hbm [shape: f32[64,128], index: 7, kind: output, shape index: {}]  }
   0x1   :  { %14 = vsyncpa [#allocation3 + $0x1], 0  ;;  %s715_s24 = smov 0   ;;  %s717_s25 = smov 0  }
   0x2   :  { %s719_s26 = smov 0   ;;  %s721_s27 = smov 0  }
   0x3 LB: > { %s736_s28 = sadd.s32 4294967295, %s671_s27   ;;  %s541_s29 = sadd.s32 4294967294, %s671_s27   ;;  %s671_s27 = sphi %s721_s27, %s838_s27   ;;  %s667_s26 = sphi %s719_s26, %s837_s26   ;;  %s663_s25 = sphi %s717_s25, %s836_s25   ;;  %s659_s24 = sphi %s715_s24, %s835_s24  }
   0x4   : > { %s740_s30 = sadd.s32 1, %s671_s27   ;;  %s189_s8 = sadd.s32 1, %s667_s26 }
   0x5   : > { %s186_s9 = ssub.s32 %s671_s27, %s740_s30  ;;  %p199_p0 = scmp.ne.s32.totalorder %s667_s26, %s663_s25 }
   0x6   : > { %p187_p1 = scmp.eq.s32.totalorder %s186_s9, 0  ;;  %p200_p2 = scmp.eq.s32.totalorder %s736_s28, 3 }
   0x7   : > { %p205_p3 = scmp.ne.s32.totalorder %s663_s25, %s659_s24  ;;  %p206_p4 = scmp.eq.s32.totalorder %s541_s29, 3 }
   0x8   : > { %s751_s10 = scalar_select %p187_p1, %s667_s26, %s189_s8  }
   0x9   : > { %p753_p5 = por %p200_p2, %p199_p0  ;;  %p757_p6 = por %p206_p4, %p205_p3 }
   0xa   : > { %p544_p7 = scmp.ge.s32.totalorder %s671_s27, 1  ;;  %p263_p8 = scmp.lt.s32.totalorder %s671_s27, 5 }
   0xc   : > { %p264_p9 = pnand %p544_p7, %p263_p8 }
   0xd   : > { %s546_s15 = sshll.u32 (!%p264_p9), %s736_s28, 1  ;;  %s629_s22 = scalar_lea.hbm (!%p264_p9), %s832_s7, 64 }
   0xe   : > { %267 = sbr.rel (%p264_p9) target bundleno = 172 (0xac), region = 48  ;;  %p306_p10 = scmp.lt.s32.totalorder (!%p264_p9), %s546_s15, 7 }
  0x13   : > { %v398_v0 = vld [vmem:[%s830_s5] sm:$0xff]  ;;  %v331_v1 = vld [vmem:[%s829_s4 + $0x8] sm:$0xf]  ;;  %vm339_vm0 = vcmask 1043456   ;;  %s840_s15 = smov (!%p306_p10, %s546_s15), 7  ;;  %vm399_vm1 = vcmask 64512  }
  0x14   : > { %421 = vmatpush.msra.mxu2 %v398_v0  ;;  %552 = vmatpush.msk.msra.mxu0 %vm339_vm0, %v331_v1  ;;  %v327_v2 = vld [vmem:[%s828_s3 + $0x8] sm:$0xff]  ;;  %v330_v3 = vld [vmem:[%s829_s4] sm:$0xff]  ;;  %s547_s29 = sshll.u32 %s840_s15, 3  ;;  %vm332_vm2 = vcmask 97280   ;;  %vm366_vm3 = vcmask 130048   ;;  %s302_s15 = sand.u32 1, %s663_s25  }
  0x15   : > { %v326_v4 = vld [vmem:[%s828_s3] sm:$0xff]  ;;  %387 = vmatpush.msra.mxu1 %v327_v2  ;;  %565 = vmatpush.msk.msra.mxu3 %vm339_vm0, %v331_v1  ;;  %s321_s13 = scalar_lea.vmem %s827_s2, %s547_s29  ;;  %s315_s17 = scalar_lea.vmem %s826_s1, %s547_s29 }
  0x16   : > { %358 = vmatpush.msra.mxu0 %v330_v3  ;;  %v396_v5 = vld [vmem:[%s321_s13] sm:$0xff]  ;;  %s309_s20 = scalar_lea.vmem %s825_s0, %s547_s29  ;;  %v329_v7 = vld [vmem:[%s315_s17 + $0x8] sm:$0xff]  ;;  %s545_s21 = sshll.u32 %s302_s15, 4 }
  0x17   : > { %388 = vmatpush.msra.mxu1 %v326_v4  ;;  %566 = vmatpush.msra.mxu3 %v330_v3  ;;  %v328_v6 = vld [vmem:[%s315_s17] sm:$0xff]  ;;  %v397_v9 = vld [vmem:[%s321_s13 + $0x8] sm:$0xff]  ;;  %s564_s29 = sshll.u32 %s736_s28, 4  ;;  %s304_s14 = scalar_lea.vmem [#allocation2], %s545_s21 }
  0x18   : > { %557 = vmatmul.msk.f32.vlgmr.msra.gmra.mxu2 %vm399_vm1, %v396_v5  ;;  %553 = vmatmul.msk.f32.vlgmr.msra.gmra.mxu0 %vm332_vm2, %v328_v6  ;;  %v324_v8 = vld [vmem:[%s309_s20] sm:$0xff]  ;;  %v325_v10 = vld [vmem:[%s309_s20 + $0x8] sm:$0xff]  ;;  %s451_s13 = scalar_lea.hbm %s832_s7, %s564_s29  ;;  %s452_s16 = sshll.u32 %s304_s14, 4  ;;  %s453_s16 = int_to_ptr.vmem [resolvable:$true] %s452_s16 }
  0x19   : > { %555 = vmatmul.msk.f32.vlgmr.msra.gmra.mxu1 %vm366_vm3, %v324_v8  ;;  %554 = vmatmul.msk.f32.vlgmr.msra.gmra.mxu3 %vm332_vm2, %v329_v7  ;;  %v608_v14 = vld [vmem:[%s831_s6] ss:$0 sm:$0xff]  ;;  %s454_s17 = sshll.u32 %s451_s13, 4  ;;  %s440_s28 = scalar_lea.sflag [#allocation3], %s302_s15  ;;  %s455_s17 = int_to_ptr.hbm [resolvable:$true] %s454_s17 }
  0x1a   : > { %s623_s18 = sshra.s32 %s455_s17, 4  ;;  %s624_s18 = int_to_ptr.hbm [resolvable:$true] %s623_s18 }
  0x1b   : > { %s625_s19 = scalar_lea.hbm %s624_s18, 16  ;;  %p630_p0 = scmp.lt.s32.totalorder %s624_s18, %s832_s7 }
  0x1c   : > { %p626_p11 = scmp.ne.s32.totalorder %s624_s18, %s625_s19  ;;  %p631_p1 = scmp.lt.s32.totalorder %s629_s22, %s625_s19 }
  0x1e   : > { %p627_p12 = pnand %p626_p11, %p753_p5  ;;  %p632_p2 = por %p631_p1, %p630_p0 }
  0x20   : > { %558 = vmatmul.msk.f32.gmra.mxu2 %vm399_vm1, %v397_v9  ;;  %p628_p13 = pneg %p627_p12 }
  0x21   : > { %556 = vmatmul.msk.f32.gmra.mxu1 %vm366_vm3, %v325_v10 }
  0x22   : > { %p633_p3 = pnand %p632_p2, %p628_p13 }
  0x95   : > { %v360_v11 = vpop.f32.mrf.mxu0 }
  0x96   : > { %v390_v12 = vpop.f32.mrf.mxu1 }
  0x97   : > { %v391_v13 = vadd.f32 %v390_v12, %v360_v11 }
  0x9b   : > { %v423_v15 = vpop.f32.mrf.mxu2 }
  0x9c   : > { %v429_v16 = vadd.f32 %v423_v15, %v391_v13  ;;  %v363_v17 = vpop.f32.mrf.mxu3 }
  0x9e   : > { %v435_v18 = vadd.f32 %v608_v14, %v429_v16  ;;  %v393_v19 = vpop.f32.mrf.mxu1 }
  0x9f   : > { %v394_v20 = vadd.f32 %v393_v19, %v363_v17 }
  0xa0   : > { %437 = vst [vmem:[%s304_s14] sm:$0xff] %v435_v18 }
  0xa3   : > { %v426_v21 = vpop.f32.mrf.mxu2 }
  0xa4   : > { %v430_v22 = vadd.f32 %v426_v21, %v394_v20 }
  0xa6   : > { %v436_v23 = vadd.f32 %v608_v14, %v430_v22 }
  0xa8   : > { %438 = vst [vmem:[%s304_s14 + $0x8] sm:$0xff] %v436_v23 }
  0xa9   : > { %636 = shalt.err (!%p633_p3)
}
  0xaa   : > { %s673_s15 = smov 128   ;;  %s674_s8 = smov 8  }
  0xab   : > { %567 = dma.vmem_to_hbm [thread:$0]  (%p753_p5), %s453_s16, 256, %s455_s17, %s440_s28, %s673_s15, %s673_s15, %s674_s8  }
  0xac PF: > { %p573_p4 = scmp.ge.s32.totalorder %s671_s27, 2  ;;  %s469_s9 = sand.u32 1, %s659_s24  }
  0xad   : > { %s470_s13 = scalar_lea.sflag [#allocation3], %s469_s9 }
  0xae   : > { %p570_p7 = pnand %p573_p4, %p757_p6 }
  0xb0   : > { %p571_p8 = pneg %p570_p7 }
  0xb2   : > { %654 = dma.done.wait (%p571_p8), %s470_s13, 256  }
  0xb3   : > { %656 = vsyncadd (%p571_p8), %s470_s13, 4294967040  ;;  %p17_p9 = scmp.ge.s32.totalorder %s740_s30, 6   ;;  %s835_s24 = smov %s663_s25 }
  0xb4   : > { %s836_s25 = smov %s667_s26  ;;  %s837_s26 = smov %s751_s10 }
  0xb5   : > { %s838_s27 = smov %s740_s30  ;;  %19 = sbr.rel (!%p17_p9) target bundleno = 3 (0x3), region = 89 }
  0xba   :  { %476 = vsyncpa [#allocation3], 1 }
  0xbb   :  { %478 = vsyncpa [#allocation3 + $0x1], 1 }

</bundles_post_ra>
